<compile_context>
chip_gen: v6e
topology: v6e:2x2x1
jax: 0.10.0
libtpu: 0.0.40
codegen_flags: <defaults>
</compile_context>

<pallas_src>
import jax
import jax.numpy as jnp
from jax import lax
from jax.experimental import pallas as pl
from jax.experimental.pallas import tpu as pltpu


def mf_kernel(idx_ref, tt_ref, w1t_ref, b1c_ref, w2t_ref, b2c_ref, w3c_ref,
              b3_ref, o_ref):
    idx = idx_ref[...]                               # (4, bt) int32, batch on lanes
    n_rows = tt_ref.shape[1]
    bt = idx.shape[1]

    # Fused embedding gather on the MXU: multi-hot selector (exactly one hit
    # per field; per-field row offsets are disjoint) @ combined table.
    rid = lax.broadcasted_iota(jnp.int32, (n_rows, bt), 0)
    mh = ((rid == idx[0:1, :]) | (rid == idx[1:2, :]) |
          (rid == idx[2:3, :]) | (rid == idx[3:4, :])).astype(jnp.float32)
    xt = jnp.dot(tt_ref[...], mh, preferred_element_type=jnp.float32)   # (d_in, bt)

    # Layer 1: (L1, d_in) @ (d_in, bt) + (L1, 1) column bias, ReLU.
    h1 = jnp.dot(w1t_ref[...], xt, preferred_element_type=jnp.float32) + b1c_ref[...]
    h1 = jnp.maximum(h1, 0.0)

    # Layer 2: (L2, L1) @ (L1, bt) + (L2, 1) column bias, ReLU.
    h2 = jnp.dot(w2t_ref[...], h1, preferred_element_type=jnp.float32) + b2c_ref[...]
    h2 = jnp.maximum(h2, 0.0)
    # dropout: identity in eval mode

    # Output layer (L2 -> 1) on VPU/XLU: broadcast-mul + sublane reduce.
    out = jnp.sum(h2 * w3c_ref[...], axis=0, keepdims=True) + b3_ref[...]   # (1, bt)
    o_ref[...] = out.astype(o_ref.dtype)


def mf_forward(params, u, v, f, c, *, batch_tile=1024):
    """Full MF.forward: fused embedding gather + MLP in one Pallas kernel."""
    B = u.shape[0]
    bt = int(batch_tile)
    if bt % 128 != 0:
        raise ValueError("batch_tile must be a multiple of 128")
    # Don't over-pad tiny batches.
    bt = min(bt, max(128, 128 * pl.cdiv(B, 128)))
    # Keep >= 2 grid steps whenever the batch allows it (v7x: 2 TensorCores).
    if B > 128 and pl.cdiv(B, bt) < 2:
        bt = max(128, 128 * pl.cdiv(pl.cdiv(B, 2), 128))
    num_tiles = pl.cdiv(B, bt)
    B_pad = num_tiles * bt
    pad = B_pad - B

    user_emb = params["user_emb"]
    item_emb = params["item_emb"]
    feat_emb = params["feature_emb"]
    ctx_emb = params["context_emb"]
    nu, emb_size = user_emb.shape
    ni = item_emb.shape[0]
    nf, emb_extra = feat_emb.shape
    nc = ctx_emb.shape[0]
    d_in = 2 * emb_size + 2 * emb_extra

    # Combined feature-major table (d_in, R_pad); column ranges per field.
    R = nu + nc + ni + nf
    R_pad = ((R + 7) // 8) * 8
    Tt = jnp.zeros((d_in, R_pad), jnp.float32)
    Tt = Tt.at[0:emb_size, 0:nu].set(user_emb.T.astype(jnp.float32))
    Tt = Tt.at[emb_size:emb_size + emb_extra, nu:nu + nc].set(ctx_emb.T.astype(jnp.float32))
    Tt = Tt.at[emb_size + emb_extra:2 * emb_size + emb_extra,
               nu + nc:nu + nc + ni].set(item_emb.T.astype(jnp.float32))
    Tt = Tt.at[2 * emb_size + emb_extra:d_in,
               nu + nc + ni:nu + nc + ni + nf].set(feat_emb.T.astype(jnp.float32))

    # Offset indices into the combined table; concat order is [U, C, V, F].
    off_c, off_v, off_f = nu, nu + nc, nu + nc + ni
    idx = jnp.stack([u, c + off_c, v + off_v, f + off_f], axis=0).astype(jnp.int32)
    if pad:
        idx = jnp.pad(idx, ((0, 0), (0, pad)))        # padded cols -> row 0 (discarded)

    w1t = params["w1"].T             # (L1, d_in)
    b1c = params["b1"].T             # (L1, 1)
    w2t = params["w2"].T             # (L2, L1)
    b2c = params["b2"].T             # (L2, 1)
    w3c = params["w3"]               # (L2, 1)
    b3 = params["b3"]                # (1, 1)
    L1, L2 = w1t.shape[0], w2t.shape[0]

    flops = 2 * B_pad * (d_in * R_pad + L1 * d_in + L2 * L1 + L2)
    bytes_accessed = 4 * (idx.size + Tt.size + w1t.size + w2t.size
                          + L1 + L2 + L2 + 1 + B_pad)
    cost = pl.CostEstimate(flops=flops, transcendentals=0,
                           bytes_accessed=bytes_accessed)

    def invariant(shape):
        return pl.BlockSpec(shape, lambda i: (0, 0))

    out = pl.pallas_call(
        mf_kernel,
        out_shape=jax.ShapeDtypeStruct((1, B_pad), jnp.float32),
        grid_spec=pltpu.PrefetchScalarGridSpec(
            num_scalar_prefetch=0,
            grid=(num_tiles,),
            in_specs=[
                pl.BlockSpec((4, bt), lambda i: (0, i)),   # indices tile
                invariant(Tt.shape),
                invariant(w1t.shape), invariant(b1c.shape),
                invariant(w2t.shape), invariant(b2c.shape),
                invariant(w3c.shape), invariant(b3.shape),
            ],
            out_specs=pl.BlockSpec((1, bt), lambda i: (0, i)),
        ),
        compiler_params=pltpu.CompilerParams(
            dimension_semantics=("parallel",),
        ),
        cost_estimate=cost,
    )(idx, Tt, w1t, b1c, w2t, b2c, w3c, b3)

    return out[0, :B].reshape(B, 1)


def init_params(key, num_users, num_items, num_feature, num_context,
                emb_size, emb_extra, layer_size_1, layer_size_2):
    ks = jax.random.split(key, 10)
    d_in = emb_size * 2 + emb_extra * 2

    def linear(kw, kb, fan_in, fan_out):
        # PyTorch nn.Linear default init: U(-1/sqrt(fan_in), 1/sqrt(fan_in))
        bound = 1.0 / jnp.sqrt(fan_in)
        w = jax.random.uniform(kw, (fan_in, fan_out), jnp.float32, -bound, bound)
        b = jax.random.uniform(kb, (1, fan_out), jnp.float32, -bound, bound)
        return w, b

    params = {
        # embedding tables: uniform_(0, 0.05) as in the module's __init__
        "user_emb": jax.random.uniform(ks[0], (num_users, emb_size), jnp.float32, 0.0, 0.05),
        "item_emb": jax.random.uniform(ks[1], (num_items, emb_size), jnp.float32, 0.0, 0.05),
        "feature_emb": jax.random.uniform(ks[2], (num_feature, emb_extra), jnp.float32, 0.0, 0.05),
        "context_emb": jax.random.uniform(ks[3], (num_context, emb_extra), jnp.float32, 0.0, 0.05),
    }
    params["w1"], params["b1"] = linear(ks[4], ks[5], d_in, layer_size_1)
    params["w2"], params["b2"] = linear(ks[6], ks[7], layer_size_1, layer_size_2)
    params["w3"], params["b3"] = linear(ks[8], ks[9], layer_size_2, 1)
    return params


def reference_forward(params, u, v, f, c):
    """Pure-JAX reference for correctness check."""
    U = params["user_emb"][u]
    V = params["item_emb"][v]
    F_ = params["feature_emb"][f]
    C = params["context_emb"][c]
    x = jnp.concatenate([U, C, V, F_], axis=1)
    h1 = jnp.maximum(x @ params["w1"] + params["b1"], 0.0)
    h2 = jnp.maximum(h1 @ params["w2"] + params["b2"], 0.0)
    return h2 @ params["w3"] + params["b3"]


if __name__ == "__main__":
    # Small, forward-consistent shapes.
    num_users, num_items = 50, 60
    num_feature, num_context = 20, 10
    emb_size, emb_extra = 32, 8
    layer_size_1, layer_size_2 = 64, 16

    key = jax.random.PRNGKey(0)
    keys = jax.random.split(key, 13)
    params = init_params(keys[0], num_users, num_items, num_feature, num_context,
                         emb_size, emb_extra, layer_size_1, layer_size_2)

    def make_batch(k0, k1, k2, k3, batch):
        return (jax.random.randint(k0, (batch,), 0, num_users),
                jax.random.randint(k1, (batch,), 0, num_items),
                jax.random.randint(k2, (batch,), 0, num_feature),
                jax.random.randint(k3, (batch,), 0, num_context))

    # --- test 1: small batch, single grid step (padded up to one 128 tile) ---
    u, v, f, c = make_batch(keys[1], keys[2], keys[3], keys[4], 16)
    out = jax.block_until_ready(mf_forward(params, u, v, f, c))
    ref = jax.block_until_ready(reference_forward(params, u, v, f, c))
    assert out.shape == (16, 1), out.shape
    assert jnp.allclose(out, ref, atol=1e-5, rtol=1e-5), (out, ref)

    # --- test 2: ragged batch spanning multiple grid steps ---
    u2, v2, f2, c2 = make_batch(keys[5], keys[6], keys[7], keys[8], 200)
    out2 = jax.block_until_ready(mf_forward(params, u2, v2, f2, c2))
    ref2 = jax.block_until_ready(reference_forward(params, u2, v2, f2, c2))
    assert out2.shape == (200, 1), out2.shape
    assert jnp.allclose(out2, ref2, atol=1e-5, rtol=1e-5), (out2, ref2)

    # --- test 3: larger batch, exercises the big-tile / 2-tile path ---
    u3, v3, f3, c3 = make_batch(keys[9], keys[10], keys[11], keys[12], 1000)
    out3 = jax.block_until_ready(mf_forward(params, u3, v3, f3, c3, batch_tile=1024))
    ref3 = jax.block_until_ready(reference_forward(params, u3, v3, f3, c3))
    assert out3.shape == (1000, 1), out3.shape
    assert jnp.allclose(out3, ref3, atol=1e-5, rtol=1e-5), (out3, ref3)

    print("KERNEL_OK")
</pallas_src>

<mosaic_0001>
module attributes {stable_mosaic.version = 11 : i64} {
  func.func @mf_kernel(%arg0: i32, %arg1: memref<4x128xi32, #tpu.memory_space<vmem>>, %arg2: memref<80x144xf32, #tpu.memory_space<vmem>>, %arg3: memref<64x80xf32, #tpu.memory_space<vmem>>, %arg4: memref<64x1xf32, #tpu.memory_space<vmem>>, %arg5: memref<16x64xf32, #tpu.memory_space<vmem>>, %arg6: memref<16x1xf32, #tpu.memory_space<vmem>>, %arg7: memref<16x1xf32, #tpu.memory_space<vmem>>, %arg8: memref<1x1xf32, #tpu.memory_space<vmem>>, %arg9: memref<1x128xf32, #tpu.memory_space<vmem>>) attributes {dimension_semantics = [#tpu.dimension_semantics<parallel>], iteration_bounds = array<i64: 1>, scalar_prefetch = 0 : i64, scratch_operands = 0 : i64, tpu.core_type = #tpu.core_type<tc>, window_params = [{transform_indices = @transform_0, window_bounds = array<i64: 4, 128>}, {pipeline_mode = #tpu.pipeline_mode<synchronous>, transform_indices = @transform_1, window_bounds = array<i64: 80, 144>}, {pipeline_mode = #tpu.pipeline_mode<synchronous>, transform_indices = @transform_2, window_bounds = array<i64: 64, 80>}, {pipeline_mode = #tpu.pipeline_mode<synchronous>, transform_indices = @transform_3, window_bounds = array<i64: 64, 1>}, {pipeline_mode = #tpu.pipeline_mode<synchronous>, transform_indices = @transform_4, window_bounds = array<i64: 16, 64>}, {pipeline_mode = #tpu.pipeline_mode<synchronous>, transform_indices = @transform_5, window_bounds = array<i64: 16, 1>}, {pipeline_mode = #tpu.pipeline_mode<synchronous>, transform_indices = @transform_6, window_bounds = array<i64: 16, 1>}, {pipeline_mode = #tpu.pipeline_mode<synchronous>, transform_indices = @transform_7, window_bounds = array<i64: 1, 1>}, {transform_indices = @transform_8, window_bounds = array<i64: 1, 128>}]} {
    %c0 = arith.constant 0 : index
    %c0_0 = arith.constant 0 : index
    %0 = vector.load %arg1[%c0, %c0_0] : memref<4x128xi32, #tpu.memory_space<vmem>>, vector<4x128xi32>
    %1 = tpu.iota {dimensions = array<i32: 0>} : vector<144x128xi32>
    %2 = vector.extract_strided_slice %0 {offsets = [0, 0], sizes = [1, 128], strides = [1, 1]} : vector<4x128xi32> to vector<1x128xi32>
    %3 = vector.broadcast %2 : vector<1x128xi32> to vector<144x128xi32>
    %4 = arith.cmpi eq, %1, %3 : vector<144x128xi32>
    %5 = vector.extract_strided_slice %0 {offsets = [1, 0], sizes = [1, 128], strides = [1, 1]} : vector<4x128xi32> to vector<1x128xi32>
    %6 = vector.broadcast %5 : vector<1x128xi32> to vector<144x128xi32>
    %7 = arith.cmpi eq, %1, %6 : vector<144x128xi32>
    %8 = arith.ori %4, %7 : vector<144x128xi1>
    %9 = vector.extract_strided_slice %0 {offsets = [2, 0], sizes = [1, 128], strides = [1, 1]} : vector<4x128xi32> to vector<1x128xi32>
    %10 = vector.broadcast %9 : vector<1x128xi32> to vector<144x128xi32>
    %11 = arith.cmpi eq, %1, %10 : vector<144x128xi32>
    %12 = arith.ori %8, %11 : vector<144x128xi1>
    %13 = vector.extract_strided_slice %0 {offsets = [3, 0], sizes = [1, 128], strides = [1, 1]} : vector<4x128xi32> to vector<1x128xi32>
    %14 = vector.broadcast %13 : vector<1x128xi32> to vector<144x128xi32>
    %15 = arith.cmpi eq, %1, %14 : vector<144x128xi32>
    %16 = arith.ori %12, %15 : vector<144x128xi1>
    %17 = arith.extui %16 : vector<144x128xi1> to vector<144x128xi32>
    %18 = arith.sitofp %17 : vector<144x128xi32> to vector<144x128xf32>
    %c0_1 = arith.constant 0 : index
    %c0_2 = arith.constant 0 : index
    %19 = vector.load %arg2[%c0_1, %c0_2] : memref<80x144xf32, #tpu.memory_space<vmem>>, vector<80x144xf32>
    %cst = arith.constant dense<0.000000e+00> : vector<80x128xf32>
    %20 = tpu.matmul %19, %18, %cst {dimension_numbers = #tpu.dot_dimension_numbers<[1], [0], [0], [1], [0, 0, 1, 1], [], []>} : vector<80x144xf32>, vector<144x128xf32>, vector<80x128xf32> -> vector<80x128xf32>
    %c0_3 = arith.constant 0 : index
    %c0_4 = arith.constant 0 : index
    %21 = vector.load %arg3[%c0_3, %c0_4] : memref<64x80xf32, #tpu.memory_space<vmem>>, vector<64x80xf32>
    %cst_5 = arith.constant dense<0.000000e+00> : vector<64x128xf32>
    %22 = tpu.matmul %21, %20, %cst_5 {dimension_numbers = #tpu.dot_dimension_numbers<[1], [0], [0], [1], [0, 0, 1, 1], [], []>} : vector<64x80xf32>, vector<80x128xf32>, vector<64x128xf32> -> vector<64x128xf32>
    %c0_6 = arith.constant 0 : index
    %c0_7 = arith.constant 0 : index
    %23 = vector.load %arg4[%c0_6, %c0_7] : memref<64x1xf32, #tpu.memory_space<vmem>>, vector<64x1xf32>
    %24 = vector.broadcast %23 : vector<64x1xf32> to vector<64x128xf32>
    %25 = arith.addf %22, %24 : vector<64x128xf32>
    %cst_8 = arith.constant 0.000000e+00 : f32
    %26 = vector.broadcast %cst_8 : f32 to vector<64x128xf32>
    %27 = arith.maximumf %25, %26 : vector<64x128xf32>
    %c0_9 = arith.constant 0 : index
    %c0_10 = arith.constant 0 : index
    %28 = vector.load %arg5[%c0_9, %c0_10] : memref<16x64xf32, #tpu.memory_space<vmem>>, vector<16x64xf32>
    %cst_11 = arith.constant dense<0.000000e+00> : vector<16x128xf32>
    %29 = tpu.matmul %28, %27, %cst_11 {dimension_numbers = #tpu.dot_dimension_numbers<[1], [0], [0], [1], [0, 0, 1, 1], [], []>} : vector<16x64xf32>, vector<64x128xf32>, vector<16x128xf32> -> vector<16x128xf32>
    %c0_12 = arith.constant 0 : index
    %c0_13 = arith.constant 0 : index
    %30 = vector.load %arg6[%c0_12, %c0_13] : memref<16x1xf32, #tpu.memory_space<vmem>>, vector<16x1xf32>
    %31 = vector.broadcast %30 : vector<16x1xf32> to vector<16x128xf32>
    %32 = arith.addf %29, %31 : vector<16x128xf32>
    %cst_14 = arith.constant 0.000000e+00 : f32
    %33 = vector.broadcast %cst_14 : f32 to vector<16x128xf32>
    %34 = arith.maximumf %32, %33 : vector<16x128xf32>
    %c0_15 = arith.constant 0 : index
    %c0_16 = arith.constant 0 : index
    %35 = vector.load %arg7[%c0_15, %c0_16] : memref<16x1xf32, #tpu.memory_space<vmem>>, vector<16x1xf32>
    %36 = vector.broadcast %35 : vector<16x1xf32> to vector<16x128xf32>
    %37 = arith.mulf %34, %36 : vector<16x128xf32>
    %cst_17 = arith.constant dense<0.000000e+00> : vector<128xf32>
    %38 = vector.multi_reduction <add>, %37, %cst_17 [0] : vector<16x128xf32> to vector<128xf32>
    %39 = vector.shape_cast %38 : vector<128xf32> to vector<1x128xf32>
    %c0_18 = arith.constant 0 : index
    %c0_19 = arith.constant 0 : index
    %40 = vector.load %arg8[%c0_18, %c0_19] : memref<1x1xf32, #tpu.memory_space<vmem>>, vector<1x1xf32>
    %41 = vector.broadcast %40 : vector<1x1xf32> to vector<1x128xf32>
    %42 = arith.addf %39, %41 : vector<1x128xf32>
    %c0_20 = arith.constant 0 : index
    %c0_21 = arith.constant 0 : index
    %43 = vector.load %arg9[%c0_20, %c0_21] : memref<1x128xf32, #tpu.memory_space<vmem>>, vector<1x128xf32>
    tpu.vector_store %arg9[%c0_20, %c0_21], %42 {strides = array<i32>} : memref<1x128xf32, #tpu.memory_space<vmem>>, vector<1x128xf32>,
    return
  }
  func.func @transform_0(%arg0: i32) -> (i32, i32) {
    %c0_i32 = arith.constant 0 : i32
    %c0_i32_0 = arith.constant 0 : i32
    return %c0_i32, %arg0 : i32, i32
  }
  func.func @transform_1(%arg0: i32) -> (i32, i32) {
    %c0_i32 = arith.constant 0 : i32
    %c0_i32_0 = arith.constant 0 : i32
    %c0_i32_1 = arith.constant 0 : i32
    return %c0_i32, %c0_i32_0 : i32, i32
  }
  func.func @transform_2(%arg0: i32) -> (i32, i32) {
    %c0_i32 = arith.constant 0 : i32
    %c0_i32_0 = arith.constant 0 : i32
    %c0_i32_1 = arith.constant 0 : i32
    return %c0_i32, %c0_i32_0 : i32, i32
  }
  func.func @transform_3(%arg0: i32) -> (i32, i32) {
    %c0_i32 = arith.constant 0 : i32
    %c0_i32_0 = arith.constant 0 : i32
    %c0_i32_1 = arith.constant 0 : i32
    return %c0_i32, %c0_i32_0 : i32, i32
  }
  func.func @transform_4(%arg0: i32) -> (i32, i32) {
    %c0_i32 = arith.constant 0 : i32
    %c0_i32_0 = arith.constant 0 : i32
    %c0_i32_1 = arith.constant 0 : i32
    return %c0_i32, %c0_i32_0 : i32, i32
  }
  func.func @transform_5(%arg0: i32) -> (i32, i32) {
    %c0_i32 = arith.constant 0 : i32
    %c0_i32_0 = arith.constant 0 : i32
    %c0_i32_1 = arith.constant 0 : i32
    return %c0_i32, %c0_i32_0 : i32, i32
  }
  func.func @transform_6(%arg0: i32) -> (i32, i32) {
    %c0_i32 = arith.constant 0 : i32
    %c0_i32_0 = arith.constant 0 : i32
    %c0_i32_1 = arith.constant 0 : i32
    return %c0_i32, %c0_i32_0 : i32, i32
  }
  func.func @transform_7(%arg0: i32) -> (i32, i32) {
    %c0_i32 = arith.constant 0 : i32
    %c0_i32_0 = arith.constant 0 : i32
    %c0_i32_1 = arith.constant 0 : i32
    return %c0_i32, %c0_i32_0 : i32, i32
  }
  func.func @transform_8(%arg0: i32) -> (i32, i32) {
    %c0_i32 = arith.constant 0 : i32
    %c0_i32_0 = arith.constant 0 : i32
    return %c0_i32, %arg0 : i32, i32
  }
}

</mosaic_0001>

<bundles_post_ra>
// kernel: tpu_custom_call.1
= control target key start
LH: loop header
LB: loop body
LE: loop exit
PB: predicated region body
PF: predicated region fallthrough
CT: control target
= control target key end

     0   :  { %s1249_s0 = inlined_call_operand.vmem [shape: s32[4,128], index: 0, kind: input, shape index: {}]   ;;  %s1250_s1 = inlined_call_operand.vmem [shape: f32[80,144], index: 1, kind: input, shape index: {}]   ;;  %s1251_s2 = inlined_call_operand.vmem [shape: f32[64,80], index: 2, kind: input, shape index: {}]   ;;  %s1252_s3 = inlined_call_operand.vmem [shape: f32[64,1], index: 3, kind: input, shape index: {}]   ;;  %s1253_s4 = inlined_call_operand.vmem [shape: f32[16,64], index: 4, kind: input, shape index: {}]   ;;  %s1254_s5 = inlined_call_operand.vmem [shape: f32[16,1], index: 5, kind: input, shape index: {}]   ;;  %s1255_s6 = inlined_call_operand.vmem [shape: f32[16,1], index: 6, kind: input, shape index: {}]   ;;  %s1256_s7 = inlined_call_operand.<no memory space> [shape: f32[1,1], index: 7, kind: input, shape index: {}]   ;;  %s1257_s8 = inlined_call_operand.hbm [shape: f32[1,128], index: 8, kind: output, shape index: {}]  }
   0x1   :  { %v13_v0 = vstv %s1256_s7 }
   0x2   :  { %14 = vst [vmem:[#allocation2] sm:$0x1] %v13_v0 }
   0x3   :  { %v33_v1 = vlaneseq  ;;  %v231_v2 = vld [vmem:[%s1250_s1 + $0x8] sm:$0xff]  ;;  %vm250_vm0 = vcmask 130048   ;;  %v898_v3 = vmov 0.0   ;;  %v32_v5 = vld [vmem:[%s1249_s0] sm:$0xf] }
   0x4   :  { %281 = vmatprep.subr.mxu0 %v898_v3  ;;  %771 = vmatprep.mubr.msk.f32.mxu0 %vm250_vm0, %v231_v2 }
   0x5   :  { %v955_v4 = vshrl.u32 %v33_v1, 7 }
   0x7   :  { %v49_v6 = vadd.s32 120, %v955_v4  ;;  %v54_v7 = vsub.s32 0, %v955_v4  ;;  %v76_v8 = vsub.s32 1, %v955_v4  ;;  %v116_v9 = vsub.s32 2, %v955_v4 }
   0x8   :  { %v156_v10 = vsub.s32 3, %v955_v4  ;;  %v48_v11 = vadd.s32 112, %v955_v4  ;;  %v47_v16 = vadd.s32 104, %v955_v4 }
   0x9   :  { %v968_v12 = vrot.slane %v32_v5, %v54_v7  ;;  %v970_v13 = vrot.slane %v32_v5, %v76_v8  ;;  %v972_v14 = vrot.slane %v32_v5, %v116_v9 }
   0xa   :  { %v974_v15 = vrot.slane %v32_v5, %v156_v10 }
   0xb   :  { %vm71_vm1 = vcmp.eq.s32.totalorder %v49_v6, %v968_v12  ;;  %vm93_vm2 = vcmp.eq.s32.totalorder %v49_v6, %v970_v13  ;;  %vm133_vm3 = vcmp.eq.s32.totalorder %v49_v6, %v972_v14 }
   0xc   :  { %15 = vsyncpa [#allocation4], 0  ;;  %vm173_vm5 = vcmp.eq.s32.totalorder %v49_v6, %v974_v15  ;;  %vm70_vm6 = vcmp.eq.s32.totalorder %v48_v11, %v968_v12  ;;  %vm92_vm7 = vcmp.eq.s32.totalorder %v48_v11, %v970_v13  ;;  %vm132_vm9 = vcmp.eq.s32.totalorder %v48_v11, %v972_v14  ;;  %v230_v32 = vld [vmem:[%s1250_s1] sm:$0xff]  ;;  %v233_v33 = vld [vmem:[%s1250_s1 + $0x18] sm:$0xff] }
   0xd   :  { %vm111_vm4 = vmor %vm71_vm1, %vm93_vm2  ;;  %vm172_vm11 = vcmp.eq.s32.totalorder %v48_v11, %v974_v15  ;;  %v46_v17 = vadd.s32 96, %v955_v4  ;;  %v899_v18 = vmov 1.0   ;;  %vm69_vm13 = vcmp.eq.s32.totalorder %v47_v16, %v968_v12  ;;  %v232_v34 = vld [vmem:[%s1250_s1 + $0x10] sm:$0xff]  ;;  %v235_v35 = vld [vmem:[%s1250_s1 + $0x28] sm:$0xff] }
   0xe   :  { %vm151_vm8 = vmor %vm111_vm4, %vm133_vm3  ;;  %vm91_vm14 = vcmp.eq.s32.totalorder %v47_v16, %v970_v13  ;;  %vm131_vm1 = vcmp.eq.s32.totalorder %v47_v16, %v972_v14  ;;  %vm171_vm3 = vcmp.eq.s32.totalorder %v47_v16, %v974_v15  ;;  %v45_v19 = vadd.s32 88, %v955_v4  ;;  %v234_v36 = vld [vmem:[%s1250_s1 + $0x20] sm:$0xff]  ;;  %v237_v37 = vld [vmem:[%s1250_s1 + $0x38] sm:$0xff] }
   0xf   :  { %vm191_vm10 = vmor %vm151_vm8, %vm173_vm5  ;;  %vm68_vm5 = vcmp.eq.s32.totalorder %v46_v17, %v968_v12  ;;  %vm130_vm8 = vcmp.eq.s32.totalorder %v46_v17, %v972_v14  ;;  %v44_v20 = vadd.s32 80, %v955_v4  ;;  %v43_v21 = vadd.s32 72, %v955_v4  ;;  %v236_v38 = vld [vmem:[%s1250_s1 + $0x30] sm:$0xff]  ;;  %v239_v39 = vld [vmem:[%s1250_s1 + $0x48] sm:$0xff] }
  0x10   :  { %753 = vmatpush1.msk.msra.mxu0 %vm191_vm10, %v899_v18  ;;  %vm110_vm12 = vmor %vm70_vm6, %vm92_vm7  ;;  %vm90_vm6 = vcmp.eq.s32.totalorder %v46_v17, %v970_v13  ;;  %vm170_vm10 = vcmp.eq.s32.totalorder %v46_v17, %v974_v15  ;;  %v42_v22 = vadd.s32 64, %v955_v4  ;;  %v41_v23 = vadd.s32 56, %v955_v4  ;;  %v238_v40 = vld [vmem:[%s1250_s1 + $0x40] sm:$0xff]  ;;  %v241_v41 = vld [vmem:[%s1250_s1 + $0x58] sm:$0xff] }
  0x11   :  { %283 = vmatprep.subr.mxu0 %v898_v3  ;;  %vm150_vm15 = vmor %vm110_vm12, %vm132_vm9  ;;  %vm67_vm12 = vcmp.eq.s32.totalorder %v45_v19, %v968_v12  ;;  %v40_v24 = vadd.s32 48, %v955_v4  ;;  %v39_v25 = vadd.s32 40, %v955_v4  ;;  %v38_v26 = vadd.s32 32, %v955_v4  ;;  %v240_v42 = vld [vmem:[%s1250_s1 + $0x50] sm:$0xff]  ;;  %v243_v43 = vld [vmem:[%s1250_s1 + $0x68] sm:$0xff] }
  0x12   :  { %vm190_vm2 = vmor %vm150_vm15, %vm172_vm11  ;;  %vm129_vm15 = vcmp.eq.s32.totalorder %v45_v19, %v972_v14  ;;  %v37_v27 = vadd.s32 24, %v955_v4  ;;  %v36_v28 = vadd.s32 16, %v955_v4  ;;  %v35_v29 = vadd.s32 8, %v955_v4  ;;  %v242_v44 = vld [vmem:[%s1250_s1 + $0x60] sm:$0xff]  ;;  %v245_v45 = vld [vmem:[%s1250_s1 + $0x78] sm:$0xff] }
  0x13   :  { %754 = vmatpush1.msk.msra.mxu0 %vm190_vm2, %v899_v18  ;;  %vm109_vm4 = vmor %vm69_vm13, %vm91_vm14  ;;  %vm89_vm13 = vcmp.eq.s32.totalorder %v45_v19, %v970_v13  ;;  %vm169_vm2 = vcmp.eq.s32.totalorder %v45_v19, %v974_v15  ;;  %v51_v30 = vadd.s32 136, %v955_v4  ;;  %v50_v31 = vadd.s32 128, %v955_v4  ;;  %v244_v46 = vld [vmem:[%s1250_s1 + $0x70] sm:$0xff]  ;;  %v247_v47 = vld [vmem:[%s1250_s1 + $0x88] sm:$0xff] }
  0x14   :  { %285 = vmatprep.subr.mxu0 %v898_v3  ;;  %vm149_vm7 = vmor %vm109_vm4, %vm131_vm1  ;;  %vm66_vm4 = vcmp.eq.s32.totalorder %v44_v20, %v968_v12  ;;  %v246_v48 = vld [vmem:[%s1250_s1 + $0x80] sm:$0xff]  ;;  %v249_v49 = vld [vmem:[%s1250_s1 + $0x98] sm:$0xff]  ;;  %v900_v54 = vmov 0  }
  0x15   :  { %vm189_vm9 = vmor %vm149_vm7, %vm171_vm3  ;;  %vm128_vm7 = vcmp.eq.s32.totalorder %v44_v20, %v972_v14  ;;  %v248_v50 = vld [vmem:[%s1250_s1 + $0x90] sm:$0xff]  ;;  %v396_v51 = vld [vmem:[%s1251_s2] sm:$0xff]  ;;  %874 = vset.pattern.permute.xlu0 %v900_v54  ;;  %875 = vset.pattern.permute.xlu1 %v900_v54 }
  0x16   :  { %755 = vmatpush1.msk.msra.mxu0 %vm189_vm9, %v899_v18  ;;  %vm108_vm11 = vmor %vm68_vm5, %vm90_vm6  ;;  %vm88_vm5 = vcmp.eq.s32.totalorder %v44_v20, %v970_v13  ;;  %vm168_vm9 = vcmp.eq.s32.totalorder %v44_v20, %v974_v15  ;;  %v411_v52 = vld [vmem:[%s1252_s3 + $0x38] sm:$0xff]  ;;  %v409_v53 = vld [vmem:[%s1252_s3 + $0x28] sm:$0xff] }
  0x17   :  { %287 = vmatprep.subr.mxu0 %v898_v3  ;;  %vm148_vm14 = vmor %vm108_vm11, %vm130_vm8  ;;  %vm65_vm11 = vcmp.eq.s32.totalorder %v43_v21, %v968_v12  ;;  %449 = vperm.xlu0 %874, %v411_v52   ;;  %v410_v55 = vld [vmem:[%s1252_s3 + $0x30] sm:$0xff]  ;;  %v408_v56 = vld [vmem:[%s1252_s3 + $0x20] sm:$0xff] }
  0x18   :  { %vm188_vm1 = vmor %vm148_vm14, %vm170_vm10  ;;  %vm127_vm14 = vcmp.eq.s32.totalorder %v43_v21, %v972_v14  ;;  %439 = vperm.xlu1 %875, %v409_v53   ;;  %v407_v57 = vld [vmem:[%s1252_s3 + $0x18] sm:$0xff]  ;;  %v406_v58 = vld [vmem:[%s1252_s3 + $0x10] sm:$0xff] }
  0x19   :  { %756 = vmatpush1.msk.msra.mxu0 %vm188_vm1, %v899_v18  ;;  %vm107_vm3 = vmor %vm67_vm12, %vm89_vm13  ;;  %vm87_vm12 = vcmp.eq.s32.totalorder %v43_v21, %v970_v13  ;;  %vm167_vm1 = vcmp.eq.s32.totalorder %v43_v21, %v974_v15  ;;  %v405_v59 = vld [vmem:[%s1252_s3 + $0x8] sm:$0xff]  ;;  %v404_v60 = vld [vmem:[%s1252_s3] sm:$0xff] }
  0x1a   :  { %289 = vmatprep.subr.mxu0 %v898_v3  ;;  %vm147_vm6 = vmor %vm107_vm3, %vm129_vm15  ;;  %vm64_vm3 = vcmp.eq.s32.totalorder %v42_v22, %v968_v12  ;;  %v592_v61 = vld [vmem:[%s1254_s5] sm:$0xff]  ;;  %v593_v62 = vld [vmem:[%s1254_s5 + $0x8] sm:$0xff] }
  0x1b   :  { %vm187_vm8 = vmor %vm147_vm6, %vm169_vm2  ;;  %vm126_vm6 = vcmp.eq.s32.totalorder %v42_v22, %v972_v14  ;;  %444 = vperm.xlu0 %874, %v410_v55   ;;  %v688_v63 = vld [vmem:[%s1255_s6] sm:$0xff]  ;;  %v689_v0 = vld [vmem:[%s1255_s6 + $0x8] sm:$0xff] }
  0x1c   :  { %757 = vmatpush1.msk.msra.mxu0 %vm187_vm8, %v899_v18  ;;  %vm106_vm10 = vmor %vm66_vm4, %vm88_vm5  ;;  %vm86_vm4 = vcmp.eq.s32.totalorder %v42_v22, %v970_v13  ;;  %vm166_vm8 = vcmp.eq.s32.totalorder %v42_v22, %v974_v15  ;;  %434 = vperm.xlu1 %875, %v408_v56   ;;  %v709_v1 = vld [vmem:[#allocation2] sm:$0x1] }
  0x1d   :  { %291 = vmatprep.subr.mxu0 %v898_v3  ;;  %vm146_vm13 = vmor %vm106_vm10, %vm128_vm7  ;;  %vm63_vm10 = vcmp.eq.s32.totalorder %v41_v23, %v968_v12 }
  0x1e   :  { %vm186_vm15 = vmor %vm146_vm13, %vm168_vm9  ;;  %vm125_vm13 = vcmp.eq.s32.totalorder %v41_v23, %v972_v14 }
  0x1f   :  { %758 = vmatpush1.msk.msra.mxu0 %vm186_vm15, %v899_v18  ;;  %vm105_vm2 = vmor %vm65_vm11, %vm87_vm12  ;;  %vm85_vm11 = vcmp.eq.s32.totalorder %v41_v23, %v970_v13  ;;  %vm165_vm15 = vcmp.eq.s32.totalorder %v41_v23, %v974_v15  ;;  %429 = vperm.xlu0 %874, %v407_v57  }
  0x20   :  { %293 = vmatprep.subr.mxu0 %v898_v3  ;;  %vm145_vm5 = vmor %vm105_vm2, %vm127_vm14  ;;  %vm62_vm2 = vcmp.eq.s32.totalorder %v40_v24, %v968_v12  ;;  %424 = vperm.xlu1 %875, %v406_v58  }
  0x21   :  { %vm185_vm7 = vmor %vm145_vm5, %vm167_vm1  ;;  %vm124_vm5 = vcmp.eq.s32.totalorder %v40_v24, %v972_v14 }
  0x22   :  { %759 = vmatpush1.msk.msra.mxu0 %vm185_vm7, %v899_v18  ;;  %vm104_vm9 = vmor %vm64_vm3, %vm86_vm4  ;;  %vm84_vm3 = vcmp.eq.s32.totalorder %v40_v24, %v970_v13  ;;  %vm164_vm7 = vcmp.eq.s32.totalorder %v40_v24, %v974_v15  ;;  %v397_v24 = vld [vmem:[%s1251_s2 + $0x8] sm:$0xff] }
  0x23   :  { %295 = vmatprep.subr.mxu0 %v898_v3  ;;  %vm144_vm12 = vmor %vm104_vm9, %vm126_vm6  ;;  %vm61_vm9 = vcmp.eq.s32.totalorder %v39_v25, %v968_v12  ;;  %419 = vperm.xlu0 %874, %v405_v59  }
  0x24   :  { %vm184_vm14 = vmor %vm144_vm12, %vm166_vm8  ;;  %vm123_vm12 = vcmp.eq.s32.totalorder %v39_v25, %v972_v14  ;;  %414 = vperm.xlu1 %875, %v404_v60  }
  0x25   :  { %760 = vmatpush1.msk.msra.mxu0 %vm184_vm14, %v899_v18  ;;  %vm103_vm1 = vmor %vm63_vm10, %vm85_vm11  ;;  %vm83_vm10 = vcmp.eq.s32.totalorder %v39_v25, %v970_v13  ;;  %vm163_vm14 = vcmp.eq.s32.totalorder %v39_v25, %v974_v15  ;;  %v398_v25 = vld [vmem:[%s1251_s2 + $0x10] sm:$0xff] }
  0x26   :  { %297 = vmatprep.subr.mxu0 %v898_v3  ;;  %vm143_vm4 = vmor %vm103_vm1, %vm125_vm13  ;;  %vm60_vm1 = vcmp.eq.s32.totalorder %v38_v26, %v968_v12 }
  0x27   :  { %vm183_vm6 = vmor %vm143_vm4, %vm165_vm15  ;;  %vm122_vm4 = vcmp.eq.s32.totalorder %v38_v26, %v972_v14  ;;  %596 = vperm.xlu0 %874, %v592_v61  }
  0x28   :  { %761 = vmatpush1.msk.msra.mxu0 %vm183_vm6, %v899_v18  ;;  %vm102_vm8 = vmor %vm62_vm2, %vm84_vm3  ;;  %vm82_vm2 = vcmp.eq.s32.totalorder %v38_v26, %v970_v13  ;;  %vm162_vm6 = vcmp.eq.s32.totalorder %v38_v26, %v974_v15  ;;  %601 = vperm.xlu1 %875, %v593_v62   ;;  %v399_v26 = vld [vmem:[%s1251_s2 + $0x18] sm:$0xff] }
  0x29   :  { %299 = vmatprep.subr.mxu0 %v898_v3  ;;  %vm142_vm11 = vmor %vm102_vm8, %vm124_vm5  ;;  %vm59_vm8 = vcmp.eq.s32.totalorder %v37_v27, %v968_v12 }
  0x2a   :  { %vm182_vm13 = vmor %vm142_vm11, %vm164_vm7  ;;  %vm121_vm11 = vcmp.eq.s32.totalorder %v37_v27, %v972_v14 }
  0x2b   :  { %762 = vmatpush1.msk.msra.mxu0 %vm182_vm13, %v899_v18  ;;  %vm101_vm15 = vmor %vm61_vm9, %vm83_vm10  ;;  %vm81_vm9 = vcmp.eq.s32.totalorder %v37_v27, %v970_v13  ;;  %vm161_vm13 = vcmp.eq.s32.totalorder %v37_v27, %v974_v15  ;;  %692 = vperm.xlu0 %874, %v688_v63   ;;  %v400_v27 = vld [vmem:[%s1251_s2 + $0x20] sm:$0xff] }
  0x2c   :  { %301 = vmatprep.subr.mxu0 %v898_v3  ;;  %vm141_vm3 = vmor %vm101_vm15, %vm123_vm12  ;;  %vm58_vm15 = vcmp.eq.s32.totalorder %v36_v28, %v968_v12  ;;  %697 = vperm.xlu1 %875, %v689_v0   ;;  %v591_v0 = vld [vmem:[%s1253_s4 + $0x8] sm:$0xff] }
  0x2d   :  { %vm181_vm5 = vmor %vm141_vm3, %vm163_vm14  ;;  %vm120_vm3 = vcmp.eq.s32.totalorder %v36_v28, %v972_v14 }
  0x2e   :  { %763 = vmatpush1.msk.msra.mxu0 %vm181_vm5, %v899_v18  ;;  %vm100_vm7 = vmor %vm60_vm1, %vm82_vm2  ;;  %vm80_vm1 = vcmp.eq.s32.totalorder %v36_v28, %v970_v13  ;;  %vm160_vm5 = vcmp.eq.s32.totalorder %v36_v28, %v974_v15  ;;  %v401_v28 = vld [vmem:[%s1251_s2 + $0x28] sm:$0xff] }
  0x2f   :  { %303 = vmatprep.subr.mxu0 %v898_v3  ;;  %vm140_vm10 = vmor %vm100_vm7, %vm122_vm4  ;;  %vm57_vm7 = vcmp.eq.s32.totalorder %v35_v29, %v968_v12  ;;  %712 = vperm.xlu0 %874, %v709_v1  }
  0x30   :  { %vm180_vm12 = vmor %vm140_vm10, %vm162_vm6  ;;  %vm79_vm10 = vcmp.eq.s32.totalorder %v35_v29, %v970_v13 }
  0x31   :  { %764 = vmatpush1.msk.msra.mxu0 %vm180_vm12, %v899_v18  ;;  %vm99_vm14 = vmor %vm59_vm8, %vm81_vm9  ;;  %vm119_vm9 = vcmp.eq.s32.totalorder %v35_v29, %v972_v14 }
  0x32   :  { %305 = vmatprep.subr.mxu0 %v898_v3  ;;  %vm139_vm2 = vmor %vm99_vm14, %vm121_vm11  ;;  %vm159_vm11 = vcmp.eq.s32.totalorder %v35_v29, %v974_v15  ;;  %vm56_vm14 = vcmp.eq.s32.totalorder %v955_v4, %v968_v12  ;;  %v402_v29 = vld [vmem:[%s1251_s2 + $0x30] sm:$0xff] }
  0x33   :  { %vm179_vm4 = vmor %vm139_vm2, %vm161_vm13  ;;  %vm118_vm2 = vcmp.eq.s32.totalorder %v955_v4, %v972_v14 }
  0x34   :  { %765 = vmatpush1.msk.msra.mxu0 %vm179_vm4, %v899_v18  ;;  %vm98_vm6 = vmor %vm58_vm15, %vm80_vm1  ;;  %vm78_vm15 = vcmp.eq.s32.totalorder %v955_v4, %v970_v13  ;;  %vm158_vm4 = vcmp.eq.s32.totalorder %v955_v4, %v974_v15 }
  0x35   :  { %307 = vmatprep.subr.mxu0 %v898_v3  ;;  %vm138_vm8 = vmor %vm98_vm6, %vm120_vm3  ;;  %vm73_vm6 = vcmp.eq.s32.totalorder %v51_v30, %v968_v12 }
  0x36   :  { %vm178_vm12 = vmor %vm138_vm8, %vm160_vm5  ;;  %vm135_vm8 = vcmp.eq.s32.totalorder %v51_v30, %v972_v14 }
  0x37   :  { %766 = vmatpush1.msk.msra.mxu0 %vm178_vm12, %v899_v18  ;;  %vm97_vm13 = vmor %vm57_vm7, %vm79_vm10  ;;  %vm95_vm7 = vcmp.eq.s32.totalorder %v51_v30, %v970_v13  ;;  %vm175_vm12 = vcmp.eq.s32.totalorder %v51_v30, %v974_v15  ;;  %v403_v30 = vld [vmem:[%s1251_s2 + $0x38] sm:$0xff] }
  0x38   :  { %309 = vmatprep.subr.mxu0 %v898_v3  ;;  %vm137_vm1 = vmor %vm97_vm13, %vm119_vm9  ;;  %vm72_vm13 = vcmp.eq.s32.totalorder %v50_v31, %v968_v12 }
  0x39   :  { %vm177_vm3 = vmor %vm137_vm1, %vm159_vm11  ;;  %vm94_vm1 = vcmp.eq.s32.totalorder %v50_v31, %v970_v13 }
  0x3a   :  { %767 = vmatpush1.msk.msra.mxu0 %vm177_vm3, %v899_v18  ;;  %vm96_vm5 = vmor %vm56_vm14, %vm78_vm15  ;;  %vm134_vm15 = vcmp.eq.s32.totalorder %v50_v31, %v972_v14 }
  0x3b   :  { %311 = vmatprep.subr.mxu0 %v898_v3  ;;  %vm136_vm10 = vmor %vm96_vm5, %vm118_vm2  ;;  %vm174_vm2 = vcmp.eq.s32.totalorder %v50_v31, %v974_v15  ;;  %v590_v31 = vld [vmem:[%s1253_s4] sm:$0xff]  ;;  %s901_s4 = smov [#allocation3]  }
  0x3c   :  { %vm176_vm9 = vmor %vm136_vm10, %vm158_vm4  ;;  %s727_s13 = sshll.u32 %s901_s4, 4  ;;  %s728_s13 = int_to_ptr.vmem [resolvable:$true] %s727_s13 }
  0x3d   :  { %768 = vmatpush1.msk.msra.mxu0 %vm176_vm9, %v899_v18  ;;  %vm113_vm11 = vmor %vm73_vm6, %vm95_vm7  ;;  %vm452_vm7 = vcmask 654336   ;;  %s876_s14 = scalar_lea.vmem %s728_s13, 16  ;;  %s880_s15 = scalar_lea.vmem %s728_s13, 32 }
  0x3e   :  { %341 = vmatprep.subr.mxu0 %v898_v3  ;;  %vm153_vm14 = vmor %vm113_vm11, %vm135_vm8  ;;  %839 = vmatprep.mubr.msk.f32.mxu1 %vm452_vm7, %v396_v51  ;;  %p877_p0 = scmp.ne.s32.totalorder %s728_s13, %s876_s14  ;;  %p881_p1 = scmp.lt.s32.totalorder %s728_s13, %s728_s13 }
  0x3f   :  { %vm193_vm3 = vmor %vm153_vm14, %vm175_vm12  ;;  %p882_p2 = scmp.lt.s32.totalorder %s880_s15, %s876_s14 }
  0x40   :  { %769 = vmatpush2.msk.msra.mxu0 %vm193_vm3, %v899_v18  ;;  %vm112_vm4 = vmor %vm72_vm13, %vm94_vm1 }
  0x41   :  { %343 = vmatprep.subr.mxu0 %v898_v3  ;;  %vm152_vm5 = vmor %vm112_vm4, %vm134_vm15  ;;  %p883_p3 = por %p882_p2, %p881_p1 }
  0x42   :  { %vm192_vm6 = vmor %vm152_vm5, %vm174_vm2 }
  0x43   :  { %770 = vmatpush2.msk.msra.mxu0 %vm192_vm6, %v899_v18  ;;  %p884_p4 = pnand %p883_p3, %p877_p0 }
  0x44   :  { %346 = vmatmul.mubr.f32.vlgmr.msra.gmra.mxu0 %v230_v32 }
  0x45   :  { %772 = vmatprep.mubr.msk.f32.mxu0 %vm250_vm0, %v233_v33 }
  0x48   :  { %351 = vmatmul.mubr.f32.gmra.mxu0 %v232_v34 }
  0x49   :  { %773 = vmatprep.mubr.msk.f32.mxu0 %vm250_vm0, %v235_v35 }
  0x4c   :  { %356 = vmatmul.mubr.f32.gmra.mxu0 %v234_v36 }
  0x4d   :  { %774 = vmatprep.mubr.msk.f32.mxu0 %vm250_vm0, %v237_v37 }
  0x50   :  { %361 = vmatmul.mubr.f32.gmra.mxu0 %v236_v38 }
  0x51   :  { %775 = vmatprep.mubr.msk.f32.mxu0 %vm250_vm0, %v239_v39 }
  0x54   :  { %366 = vmatmul.mubr.f32.gmra.mxu0 %v238_v40 }
  0x55   :  { %776 = vmatprep.mubr.msk.f32.mxu0 %vm250_vm0, %v241_v41 }
  0x58   :  { %371 = vmatmul.mubr.f32.gmra.mxu0 %v240_v42 }
  0x59   :  { %777 = vmatprep.mubr.msk.f32.mxu0 %vm250_vm0, %v243_v43 }
  0x5c   :  { %376 = vmatmul.mubr.f32.gmra.mxu0 %v242_v44 }
  0x5d   :  { %778 = vmatprep.mubr.msk.f32.mxu0 %vm250_vm0, %v245_v45 }
  0x60   :  { %381 = vmatmul.mubr.f32.gmra.mxu0 %v244_v46 }
  0x61   :  { %779 = vmatprep.mubr.msk.f32.mxu0 %vm250_vm0, %v247_v47 }
  0x64   :  { %386 = vmatmul.mubr.f32.gmra.mxu0 %v246_v48 }
  0x65   :  { %780 = vmatprep.mubr.msk.f32.mxu0 %vm250_vm0, %v249_v49  ;;  %vm604_vm0 = vcmask 523264  }
  0x68   :  { %391 = vmatmul.mubr.f32.gmra.mxu0 %v248_v50 }
  0x92   :  { %v450_v34 = vpop.permute.xlu0 %449 }
  0x93   :  { %v440_v35 = vpop.permute.xlu1 %439 }
  0x96   :  { %v445_v39 = vpop.permute.xlu0 %444 }
  0x97   :  { %v435_v40 = vpop.permute.xlu1 %434 }
  0x9a   :  { %v430_v48 = vpop.permute.xlu0 %429 }
  0x9b   :  { %v425_v49 = vpop.permute.xlu1 %424 }
  0x9e   :  { %v420_v56 = vpop.permute.xlu0 %419 }
  0x9f   :  { %v415_v57 = vpop.permute.xlu1 %414 }
  0xa2   :  { %v597_v1 = vpop.permute.xlu0 %596 }
 0x104   :  { %v347_v2 = vpop.f32.mrf.mxu0 }
 0x106   :  { %v349_v3 = vpop.f32.mrf.mxu0 }
 0x108   :  { %v352_v5 = vpop.f32.mrf.mxu0 }
 0x10a   :  { %v354_v6 = vpop.f32.mrf.mxu0 }
 0x10c   :  { %v357_v8 = vpop.f32.mrf.mxu0 }
 0x10e   :  { %v359_v9 = vpop.f32.mrf.mxu0 }
 0x110   :  { %v362_v10 = vpop.f32.mrf.mxu0 }
 0x112   :  { %v364_v11 = vpop.f32.mrf.mxu0 }
 0x113   :  { %v693_v11 = vpop.permute.xlu0 %692 }
 0x114   :  { %v367_v12 = vpop.f32.mrf.mxu0 }
 0x116   :  { %v369_v13 = vpop.f32.mrf.mxu0 }
 0x118   :  { %v372_v14 = vpop.f32.mrf.mxu0 }
 0x11a   :  { %v374_v15 = vpop.f32.mrf.mxu0 }
 0x11c   :  { %v377_v16 = vpop.f32.mrf.mxu0 }
 0x11e   :  { %v379_v17 = vpop.f32.mrf.mxu0 }
 0x120   :  { %v382_v18 = vpop.f32.mrf.mxu0 }
 0x122   :  { %v384_v19 = vpop.f32.mrf.mxu0 }
 0x124   :  { %v387_v20 = vpop.f32.mrf.mxu0 }
 0x126   :  { %v389_v21 = vpop.f32.mrf.mxu0 }
 0x128   :  { %v392_v22 = vpop.f32.mrf.mxu0 }
 0x129   :  { %819 = vmatprep.subr.mxu1 %v392_v22 }
 0x12a   :  { %v394_v23 = vpop.f32.mrf.mxu0  ;;  %820 = vmatpush3.msra.mxu1 %v392_v22 }
 0x12b   :  { %821 = vmatprep.subr.mxu1 %v387_v20 }
 0x12c   :  { %822 = vmatpush3.msra.mxu1 %v387_v20  ;;  %v713_v20 = vpop.permute.xlu0 %712 }
 0x12d   :  { %823 = vmatprep.subr.mxu1 %v382_v18  ;;  %v718_v22 = vrot.slane %v713_v20, %v54_v7 }
 0x12e   :  { %824 = vmatpush3.msra.mxu1 %v382_v18 }
 0x12f   :  { %825 = vmatprep.subr.mxu1 %v377_v16 }
 0x130   :  { %826 = vmatpush3.msra.mxu1 %v377_v16 }
 0x131   :  { %827 = vmatprep.subr.mxu1 %v372_v14 }
 0x132   :  { %828 = vmatpush3.msra.mxu1 %v372_v14 }
 0x133   :  { %829 = vmatprep.subr.mxu1 %v367_v12 }
 0x134   :  { %830 = vmatpush3.msra.mxu1 %v367_v12 }
 0x135   :  { %831 = vmatprep.subr.mxu1 %v362_v10 }
 0x136   :  { %832 = vmatpush3.msra.mxu1 %v362_v10 }
 0x137   :  { %833 = vmatprep.subr.mxu1 %v357_v8 }
 0x138   :  { %834 = vmatpush3.msra.mxu1 %v357_v8 }
 0x139   :  { %835 = vmatprep.subr.mxu1 %v352_v5 }
 0x13a   :  { %836 = vmatpush3.msra.mxu1 %v352_v5 }
 0x13b   :  { %837 = vmatprep.subr.mxu1 %v347_v2 }
 0x13c   :  { %838 = vmatpush3.msra.mxu1 %v347_v2  ;;  %v602_v2 = vpop.permute.xlu1 %601 }
 0x13d   :  { %840 = vmatmul.mubr.msk.f32.vlgmr.msra.gmra.mxu1 %vm452_vm7, %v397_v24 }
 0x13e   :  { %842 = vmatprep.mubr.msk.f32.mxu1 %vm452_vm7, %v398_v25 }
 0x140   :  { %v698_v12 = vpop.permute.xlu1 %697 }
 0x141   :  { %843 = vmatmul.mubr.msk.f32.gmra.mxu1 %vm452_vm7, %v399_v26 }
 0x142   :  { %845 = vmatprep.mubr.msk.f32.mxu1 %vm452_vm7, %v400_v27 }
 0x145   :  { %846 = vmatmul.mubr.msk.f32.gmra.mxu1 %vm452_vm7, %v401_v28 }
 0x146   :  { %848 = vmatprep.mubr.msk.f32.mxu1 %vm452_vm7, %v402_v29 }
 0x149   :  { %849 = vmatmul.mubr.msk.f32.gmra.mxu1 %vm452_vm7, %v403_v30 }
 0x14a   :  { %867 = vmatprep.mubr.msk.f32.mxu1 %vm604_vm0, %v590_v31 }
 0x1fd   :  { %v841_v32 = vpop.f32.mrf.mxu1 }
 0x1fe   :  { %v549_v58 = vadd.f32 %v841_v32, %v420_v56 }
 0x1ff   :  { %v543_v33 = vpop.f32.mrf.mxu1 }
 0x200   :  { %v544_v60 = vadd.f32 %v543_v33, %v415_v57  ;;  %v583_v62 = vmax.f32 %v549_v58, 0.0 }
 0x201   :  { %v844_v36 = vpop.f32.mrf.mxu1 }
 0x202   :  { %v559_v52 = vadd.f32 %v844_v36, %v430_v48  ;;  %v582_v63 = vmax.f32 %v544_v60, 0.0 }
 0x203   :  { %v553_v37 = vpop.f32.mrf.mxu1 }
 0x204   :  { %v554_v54 = vadd.f32 %v553_v37, %v425_v49  ;;  %v585_v59 = vmax.f32 %v559_v52, 0.0 }
 0x205   :  { %v847_v38 = vpop.f32.mrf.mxu1 }
 0x206   :  { %v569_v45 = vadd.f32 %v847_v38, %v440_v35  ;;  %v584_v61 = vmax.f32 %v554_v54, 0.0 }
 0x207   :  { %v563_v41 = vpop.f32.mrf.mxu1 }
 0x208   :  { %v564_v50 = vadd.f32 %v563_v41, %v435_v40  ;;  %v587_v53 = vmax.f32 %v569_v45, 0.0 }
 0x209   :  { %v850_v42 = vpop.f32.mrf.mxu1 }
 0x20a   :  { %v579_v43 = vadd.f32 %v850_v42, %v450_v34  ;;  %v586_v55 = vmax.f32 %v564_v50, 0.0 }
 0x20b   :  { %v573_v44 = vpop.f32.mrf.mxu1 }
 0x20c   :  { %v589_v46 = vmax.f32 %v579_v43, 0.0  ;;  %v574_v47 = vadd.f32 %v573_v44, %v445_v39 }
 0x20e   :  { %v588_v51 = vmax.f32 %v574_v47, 0.0  ;;  %851 = vmatprep.subr.mxu1 %v589_v46 }
 0x20f   :  { %852 = vmatpush3.msra.mxu1 %v589_v46 }
 0x210   :  { %853 = vmatprep.subr.mxu1 %v588_v51 }
 0x211   :  { %854 = vmatpush3.msra.mxu1 %v588_v51 }
 0x212   :  { %855 = vmatprep.subr.mxu1 %v587_v53 }
 0x213   :  { %856 = vmatpush3.msra.mxu1 %v587_v53 }
 0x214   :  { %857 = vmatprep.subr.mxu1 %v586_v55 }
 0x215   :  { %858 = vmatpush3.msra.mxu1 %v586_v55 }
 0x216   :  { %859 = vmatprep.subr.mxu1 %v585_v59 }
 0x217   :  { %860 = vmatpush3.msra.mxu1 %v585_v59 }
 0x218   :  { %861 = vmatprep.subr.mxu1 %v584_v61 }
 0x219   :  { %862 = vmatpush3.msra.mxu1 %v584_v61 }
 0x21a   :  { %863 = vmatprep.subr.mxu1 %v583_v62 }
 0x21b   :  { %864 = vmatpush3.msra.mxu1 %v583_v62 }
 0x21c   :  { %865 = vmatprep.subr.mxu1 %v582_v63 }
 0x21d   :  { %866 = vmatpush3.msra.mxu1 %v582_v63 }
 0x21e   :  { %868 = vmatmul.mubr.msk.f32.vlgmr.msra.gmra.mxu1 %vm604_vm0, %v591_v0 }
 0x2de   :  { %v869_v3 = vpop.f32.mrf.mxu1 }
 0x2df   :  { %v683_v5 = vadd.f32 %v869_v3, %v602_v2 }
 0x2e0   :  { %v677_v6 = vpop.f32.mrf.mxu1 }
 0x2e1   :  { %v687_v8 = vmax.f32 %v683_v5, 0.0  ;;  %v678_v9 = vadd.f32 %v677_v6, %v597_v1 }
 0x2e3   :  { %v686_v10 = vmax.f32 %v678_v9, 0.0  ;;  %v701_v13 = vmul.f32 %v698_v12, %v687_v8 }
 0x2e5   :  { %v700_v14 = vmul.f32 %v693_v11, %v686_v10 }
 0x2e7   :  { %v702_v15 = vadd.f32 %v701_v13, %v700_v14 }
 0x2e9   :  { %v703_v16 = vrot.slane %v702_v15, 4 }
 0x2eb   :  { %v704_v17 = vadd.f32 %v703_v16, %v702_v15 }
 0x2ed   :  { %v705_v18 = vrot.slane %v704_v17, 2 }
 0x2ef   :  { %v706_v19 = vadd.f32 %v705_v18, %v704_v17 }
 0x2f1   :  { %v707_v21 = vrot.slane %v706_v19, 1 }
 0x2f3   :  { %v708_v23 = vadd.f32 %v707_v21, %v706_v19 }
 0x2f5   :  { %v719_v24 = vadd.f32 %v718_v22, %v708_v23 }
 0x2f7   :  { %720 = vst [vmem:[#allocation3] sm:$0x1] %v719_v24 }
 0x2f8   :  { %887 = shalt.err (!%p884_p4)
}
 0x2f9   :  { %730 = dma.vmem_to_hbm [thread:$0]  %s728_s13, 16, %s1257_s8, [#allocation4]  }
 0x2fa   :  { %896 = dma.done.wait [#allocation4], 16  }
 0x2fb   :  { %897 = vsyncadd [#allocation4], 4294967280 }
 0x2fc   :  { %734 = vsyncpa [#allocation4], 1 }

</bundles_post_ra>
